<compile_context>
chip_gen: v6e
topology: v6e:2x2x1
jax: 0.10.0
libtpu: 0.0.40
codegen_flags: <defaults>
</compile_context>

<pallas_src>
import jax
import jax.numpy as jnp
from jax.experimental import pallas as pl
from jax.experimental.pallas import tpu as pltpu


def _round_up(x, m):
    return ((x + m - 1) // m) * m


def _vecmap_linear_kernel(x_ref, wt_ref, b_ref, o_ref):
    # x_ref:  (tm, H)        activations (f32 in HBM)
    # wt_ref: (H, H_out_p)   weight, pre-transposed + lane-padded in the wrapper
    # b_ref:  (1, H_out_p)   bias (always f32)
    # o_ref:  (tm, H_out_p)  natural orientation -> lane-dense stores
    x = x_ref[...].astype(wt_ref.dtype)          # bf16 cast in-kernel (no-op for f32)
    y = jnp.dot(x, wt_ref[...], preferred_element_type=jnp.float32)
    o_ref[...] = (y + b_ref[...]).astype(o_ref.dtype)


def vecmap_linear(x_rows, w, b, *, tm=None, compute_dtype=None):
    """x_rows: (M, H) f32; w: (H_out, H) (PyTorch layout); b: (H_out,).
    Returns (M, H_out) f32."""
    M, H = x_rows.shape
    H_out = w.shape[0]

    # bf16 MXU on v5e/v6e/v7x for production-size contractions; keep f32 for
    # small K where the tight tolerance matters (and bf16 buys nothing anyway).
    if compute_dtype is None:
        compute_dtype = jnp.bfloat16 if H >= 512 else jnp.float32
    itemsize = jnp.dtype(compute_dtype).itemsize

    # Weight: transpose once in the wrapper (tiny, loop-invariant) so the kernel
    # matmul is MXU-native, and zero-pad H_out to a multiple of 128 so output
    # stores are unmasked lane-dense vst.  Bias stays f32.
    H_out_p = _round_up(H_out, 128)
    wt = w.T.astype(compute_dtype)                      # (H, H_out)
    if H_out_p != H_out:
        wt = jnp.pad(wt, ((0, 0), (0, H_out_p - H_out)))
    b2 = b.astype(jnp.float32).reshape(1, H_out)
    if H_out_p != H_out:
        b2 = jnp.pad(b2, ((0, 0), (0, H_out_p - H_out)))

    # Row padding only to 128-granularity (avoids a full jnp.pad HBM copy when M
    # is already aligned; caps wasted rows at 127).  Any further overhang of the
    # last tile is handled by the pl.cdiv grid with masked edge blocks.
    Mp = _round_up(M, 128)
    if Mp != M:
        x_rows = jnp.pad(x_rows, ((0, Mp - M), (0, 0)))

    # ---- Tile selection ----
    if tm is None:
        # Keep the double-buffered x + out pipeline buffers under ~16 MiB so the
        # kernel fits v7x's scoped VMEM with the resident weight and headroom;
        # on v5e/v6e this still allows large tiles when H is small.
        budget = 16 * 1024 * 1024
        tm = 128
        for cand in (256, 512, 1024, 2048):
            if cand <= Mp and 2 * cand * (H * itemsize + H_out_p * 4) <= budget:
                tm = cand
    else:
        tm = _round_up(tm, 128)
    tm = min(tm, Mp)
    # Guarantee >=2 grid steps when there is enough work, so ("parallel",)
    # actually uses both v7x TensorCores (no effect on single-core v5e/v6e).
    if Mp > 128 and pl.cdiv(Mp, tm) < 2:
        tm = max(128, _round_up(Mp // 2, 128))
    grid_m = pl.cdiv(Mp, tm)

    flops = 2 * M * H * H_out
    bytes_accessed = (M * H * 4) + (H * H_out_p * itemsize) + (Mp * H_out_p * 4)

    out = pl.pallas_call(
        _vecmap_linear_kernel,
        out_shape=jax.ShapeDtypeStruct((Mp, H_out_p), jnp.float32),
        grid_spec=pltpu.PrefetchScalarGridSpec(
            num_scalar_prefetch=0,
            grid=(grid_m,),
            in_specs=[
                # Activations: pipelined row tiles.
                pl.BlockSpec((tm, H), lambda i: (i, 0)),
                # Loop-invariant weight & bias: constant index_map, fetched once,
                # single-buffered to halve their VMEM footprint.
                pl.BlockSpec((H, H_out_p), lambda i: (0, 0),
                             pipeline_mode=pl.Buffered(buffer_count=1)),
                pl.BlockSpec((1, H_out_p), lambda i: (0, 0),
                             pipeline_mode=pl.Buffered(buffer_count=1)),
            ],
            out_specs=pl.BlockSpec((tm, H_out_p), lambda i: (i, 0)),
        ),
        compiler_params=pltpu.CompilerParams(
            dimension_semantics=("parallel",),
            vmem_limit_bytes=32 * 1024 * 1024,
        ),
        cost_estimate=pl.CostEstimate(
            flops=flops, transcendentals=0, bytes_accessed=bytes_accessed),
    )(x_rows, wt, b2)

    # Strip row padding and (if any) the lane padding on H_out.
    out = out[:M]
    if H_out_p != H_out:
        out = out[:, :H_out]
    return out


def vecmap_forward(X, W, b, axis=1):
    """VecMap.forward: flatten X up to `axis`, map Linear(W, b) over slices."""
    lead = X.shape[: axis + 1]
    rest = X.shape[axis + 1:]
    N = 1
    for d in lead:
        N *= d
    H = rest[-1]
    M = N
    for d in rest[:-1]:
        M *= d
    # Shared weight across slices => the whole VecMap is a single GEMM.
    rows = X.reshape(M, H)
    out_rows = vecmap_linear(rows, W, b)           # (M, H_out)
    return out_rows.reshape((N,) + tuple(rest[:-1]) + (W.shape[0],))


if __name__ == "__main__":
    key = jax.random.PRNGKey(0)
    B, G, S, H, H_out = 2, 2, 8, 32, 32
    kx, kw, kb = jax.random.split(key, 3)

    X = jax.random.normal(kx, (B, G, S, H), dtype=jnp.float32)
    # Deterministic Linear params (PyTorch convention: W is (H_out, H_in)).
    W = jax.random.normal(kw, (H_out, H), dtype=jnp.float32) * 0.1
    b = jax.random.normal(kb, (H_out,), dtype=jnp.float32) * 0.1

    out = vecmap_forward(X, W, b, axis=1)
    out = jax.block_until_ready(out)

    # Reference check: same semantics as the PyTorch per-slice loop.
    ref = jnp.einsum("nsh,oh->nso", X.reshape(B * G, S, H), W) + b
    assert out.shape == (B * G, S, H_out)
    assert jnp.allclose(out, ref, atol=1e-4, rtol=1e-4)

    print("KERNEL_OK")
</pallas_src>

<mosaic_0001>
module attributes {stable_mosaic.version = 11 : i64} {
  func.func @_vecmap_linear_kernel(%arg0: i32, %arg1: memref<128x32xf32, #tpu.memory_space<vmem>>, %arg2: memref<32x128xf32, #tpu.memory_space<vmem>>, %arg3: memref<1x128xf32, #tpu.memory_space<vmem>>, %arg4: memref<128x128xf32, #tpu.memory_space<vmem>>) attributes {dimension_semantics = [#tpu.dimension_semantics<parallel>], iteration_bounds = array<i64: 1>, scalar_prefetch = 0 : i64, scratch_operands = 0 : i64, tpu.core_type = #tpu.core_type<tc>, window_params = [{transform_indices = @transform_0, window_bounds = array<i64: 128, 32>}, {pipeline_mode = #tpu.pipeline_mode<synchronous>, transform_indices = @transform_1, window_bounds = array<i64: 32, 128>}, {pipeline_mode = #tpu.pipeline_mode<synchronous>, transform_indices = @transform_2, window_bounds = array<i64: 1, 128>}, {transform_indices = @transform_3, window_bounds = array<i64: 128, 128>}]} {
    %c0 = arith.constant 0 : index
    %c0_0 = arith.constant 0 : index
    %0 = vector.load %arg1[%c0, %c0_0] : memref<128x32xf32, #tpu.memory_space<vmem>>, vector<128x32xf32>
    %c0_1 = arith.constant 0 : index
    %c0_2 = arith.constant 0 : index
    %1 = vector.load %arg2[%c0_1, %c0_2] : memref<32x128xf32, #tpu.memory_space<vmem>>, vector<32x128xf32>
    %cst = arith.constant dense<0.000000e+00> : vector<128x128xf32>
    %2 = tpu.matmul %0, %1, %cst {dimension_numbers = #tpu.dot_dimension_numbers<[1], [0], [0], [1], [0, 0, 1, 1], [], []>} : vector<128x32xf32>, vector<32x128xf32>, vector<128x128xf32> -> vector<128x128xf32>
    %c0_3 = arith.constant 0 : index
    %c0_4 = arith.constant 0 : index
    %3 = vector.load %arg3[%c0_3, %c0_4] : memref<1x128xf32, #tpu.memory_space<vmem>>, vector<1x128xf32>
    %4 = vector.broadcast %3 : vector<1x128xf32> to vector<128x128xf32>
    %5 = arith.addf %2, %4 : vector<128x128xf32>
    %c0_5 = arith.constant 0 : index
    %c0_6 = arith.constant 0 : index
    %6 = vector.load %arg4[%c0_5, %c0_6] : memref<128x128xf32, #tpu.memory_space<vmem>>, vector<128x128xf32>
    tpu.vector_store %arg4[%c0_5, %c0_6], %5 {strides = array<i32>} : memref<128x128xf32, #tpu.memory_space<vmem>>, vector<128x128xf32>,
    return
  }
  func.func @transform_0(%arg0: i32) -> (i32, i32) {
    %c0_i32 = arith.constant 0 : i32
    %c0_i32_0 = arith.constant 0 : i32
    return %arg0, %c0_i32 : i32, i32
  }
  func.func @transform_1(%arg0: i32) -> (i32, i32) {
    %c0_i32 = arith.constant 0 : i32
    %c0_i32_0 = arith.constant 0 : i32
    %c0_i32_1 = arith.constant 0 : i32
    return %c0_i32, %c0_i32_0 : i32, i32
  }
  func.func @transform_2(%arg0: i32) -> (i32, i32) {
    %c0_i32 = arith.constant 0 : i32
    %c0_i32_0 = arith.constant 0 : i32
    %c0_i32_1 = arith.constant 0 : i32
    return %c0_i32, %c0_i32_0 : i32, i32
  }
  func.func @transform_3(%arg0: i32) -> (i32, i32) {
    %c0_i32 = arith.constant 0 : i32
    %c0_i32_0 = arith.constant 0 : i32
    return %arg0, %c0_i32 : i32, i32
  }
}

</mosaic_0001>

<bundles_post_ra>
// kernel: tpu_custom_call.1
= control target key start
LH: loop header
LB: loop body
LE: loop exit
PB: predicated region body
PF: predicated region fallthrough
CT: control target
= control target key end

     0   :  { %vm42_vm0 = vcmask 261120   ;;  %s475_s0 = inlined_call_operand.vmem [shape: f32[128,32], index: 0, kind: input, shape index: {}]   ;;  %s476_s1 = inlined_call_operand.vmem [shape: f32[32,128], index: 1, kind: input, shape index: {}]   ;;  %s477_s2 = inlined_call_operand.vmem [shape: f32[1,128], index: 2, kind: input, shape index: {}]   ;;  %s478_s3 = inlined_call_operand.hbm [shape: f32[128,128], index: 3, kind: output, shape index: {}]  }
   0x1   :  { %v34_v0 = vld [vmem:[%s476_s1 + $0x18] sm:$0xff]  ;;  %v33_v1 = vld [vmem:[%s476_s1 + $0x10] sm:$0xff]  ;;  %v32_v2 = vld [vmem:[%s476_s1 + $0x8] sm:$0xff] }
   0x2   :  { %305 = vmatprep.subr.mxu0 %v34_v0  ;;  %337 = vmatprep.subr.mxu1 %v34_v0  ;;  %v31_v3 = vld [vmem:[%s476_s1] sm:$0xff] }
   0x3   :  { %306 = vmatpush3.msra.mxu0 %v34_v0  ;;  %341 = vmatpush3.msra.mxu1 %v34_v0  ;;  %v15_v4 = vld [vmem:[%s475_s0] sm:$0xff] }
   0x4   :  { %307 = vmatprep.subr.mxu0 %v33_v1  ;;  %338 = vmatprep.subr.mxu1 %v33_v1  ;;  %v23_v5 = vld [vmem:[%s475_s0 + $0x40] sm:$0xff] }
   0x5   :  { %308 = vmatpush3.msra.mxu0 %v33_v1  ;;  %342 = vmatpush3.msra.mxu1 %v33_v1 }
   0x6   :  { %309 = vmatprep.subr.mxu0 %v32_v2  ;;  %339 = vmatprep.subr.mxu1 %v32_v2 }
   0x7   :  { %310 = vmatpush3.msra.mxu0 %v32_v2  ;;  %343 = vmatpush3.msra.mxu1 %v32_v2 }
   0x8   :  { %8 = vsyncpa [#allocation3], 0  ;;  %311 = vmatprep.subr.mxu0 %v31_v3  ;;  %340 = vmatprep.subr.mxu1 %v31_v3  ;;  %v16_v6 = vld [vmem:[%s475_s0 + $0x8] sm:$0xff]  ;;  %v17_v8 = vld [vmem:[%s475_s0 + $0x10] sm:$0xff] }
   0x9   :  { %v24_v7 = vld [vmem:[%s475_s0 + $0x48] sm:$0xff]  ;;  %312 = vmatpush3.msra.mxu0 %v31_v3  ;;  %344 = vmatpush3.msra.mxu1 %v31_v3  ;;  %v25_v9 = vld [vmem:[%s475_s0 + $0x50] sm:$0xff]  ;;  %v18_v10 = vld [vmem:[%s475_s0 + $0x18] sm:$0xff] }
   0xa   :  { %313 = vmatprep.mubr.msk.f32.mxu0 %vm42_vm0, %v15_v4  ;;  %325 = vmatprep.mubr.msk.f32.mxu1 %vm42_vm0, %v23_v5  ;;  %v26_v11 = vld [vmem:[%s475_s0 + $0x58] sm:$0xff]  ;;  %v19_v12 = vld [vmem:[%s475_s0 + $0x20] sm:$0xff]  ;;  %v20_v14 = vld [vmem:[%s475_s0 + $0x28] sm:$0xff] }
   0xb   :  { %314 = vmatmul.mubr.msk.f32.vlgmr.msra.gmra.mxu0 %vm42_vm0, %v16_v6  ;;  %326 = vmatmul.mubr.msk.f32.vlgmr.msra.gmra.mxu1 %vm42_vm0, %v24_v7  ;;  %v27_v13 = vld [vmem:[%s475_s0 + $0x60] sm:$0xff]  ;;  %v28_v15 = vld [vmem:[%s475_s0 + $0x68] sm:$0xff]  ;;  %v21_v16 = vld [vmem:[%s475_s0 + $0x30] sm:$0xff] }
   0xc   :  { %316 = vmatprep.mubr.msk.f32.mxu0 %vm42_vm0, %v17_v8  ;;  %328 = vmatprep.mubr.msk.f32.mxu1 %vm42_vm0, %v25_v9  ;;  %v29_v17 = vld [vmem:[%s475_s0 + $0x70] sm:$0xff]  ;;  %v22_v18 = vld [vmem:[%s475_s0 + $0x38] sm:$0xff]  ;;  %v268_v20 = vld [vmem:[%s477_s2] ss:$0 sm:$0xff] }
   0xd   :  { %v30_v19 = vld [vmem:[%s475_s0 + $0x78] sm:$0xff]  ;;  %s370_s0 = smov [#allocation2]  }
   0xe   :  { %s257_s2 = sshll.u32 %s370_s0, 4  ;;  %s258_s2 = int_to_ptr.vmem [resolvable:$true] %s257_s2 }
   0xf   :  { %317 = vmatmul.mubr.msk.f32.gmra.mxu0 %vm42_vm0, %v18_v10  ;;  %329 = vmatmul.mubr.msk.f32.gmra.mxu1 %vm42_vm0, %v26_v11  ;;  %s348_s1 = scalar_lea.vmem %s258_s2, 2048  ;;  %p353_p1 = scmp.lt.s32.totalorder %s258_s2, %s258_s2 }
  0x10   :  { %319 = vmatprep.mubr.msk.f32.mxu0 %vm42_vm0, %v19_v12  ;;  %331 = vmatprep.mubr.msk.f32.mxu1 %vm42_vm0, %v27_v13  ;;  %p349_p0 = scmp.ne.s32.totalorder %s258_s2, %s348_s1  ;;  %p354_p2 = scmp.lt.s32.totalorder %s348_s1, %s348_s1 }
  0x12   :  { %p355_p3 = por %p354_p2, %p353_p1 }
  0x13   :  { %320 = vmatmul.mubr.msk.f32.gmra.mxu0 %vm42_vm0, %v20_v14  ;;  %332 = vmatmul.mubr.msk.f32.gmra.mxu1 %vm42_vm0, %v28_v15 }
  0x14   :  { %322 = vmatprep.mubr.msk.f32.mxu0 %vm42_vm0, %v21_v16  ;;  %334 = vmatprep.mubr.msk.f32.mxu1 %vm42_vm0, %v29_v17  ;;  %p356_p4 = pnand %p355_p3, %p349_p0 }
  0x17   :  { %323 = vmatmul.mubr.msk.f32.gmra.mxu0 %vm42_vm0, %v22_v18  ;;  %335 = vmatmul.mubr.msk.f32.gmra.mxu1 %vm42_vm0, %v30_v19 }
  0xcb   :  { %v315_v21 = vpop.f32.mrf.mxu0  ;;  %v327_v22 = vpop.f32.mrf.mxu1 }
  0xcc   :  { %v163_v23 = vadd.f32 %v315_v21, %v268_v20  ;;  %v203_v24 = vadd.f32 %v327_v22, %v268_v20 }
  0xcd   :  { %v157_v25 = vpop.f32.mrf.mxu0  ;;  %v197_v26 = vpop.f32.mrf.mxu1 }
  0xce   :  { %237 = vst [vmem:[#allocation2 + $0x8] sm:$0xff] %v163_v23  ;;  %245 = vst [vmem:[#allocation2 + $0x48] sm:$0xff] %v203_v24  ;;  %v158_v27 = vadd.f32 %v268_v20, %v157_v25  ;;  %v198_v28 = vadd.f32 %v268_v20, %v197_v26 }
  0xcf   :  { %v318_v29 = vpop.f32.mrf.mxu0  ;;  %v330_v30 = vpop.f32.mrf.mxu1 }
  0xd0   :  { %236 = vst [vmem:[#allocation2] sm:$0xff] %v158_v27  ;;  %244 = vst [vmem:[#allocation2 + $0x40] sm:$0xff] %v198_v28  ;;  %v173_v31 = vadd.f32 %v318_v29, %v268_v20  ;;  %v213_v32 = vadd.f32 %v330_v30, %v268_v20 }
  0xd1   :  { %v167_v33 = vpop.f32.mrf.mxu0  ;;  %v207_v34 = vpop.f32.mrf.mxu1 }
  0xd2   :  { %239 = vst [vmem:[#allocation2 + $0x18] sm:$0xff] %v173_v31  ;;  %247 = vst [vmem:[#allocation2 + $0x58] sm:$0xff] %v213_v32  ;;  %v168_v35 = vadd.f32 %v268_v20, %v167_v33  ;;  %v208_v36 = vadd.f32 %v268_v20, %v207_v34 }
  0xd3   :  { %v321_v37 = vpop.f32.mrf.mxu0  ;;  %v333_v38 = vpop.f32.mrf.mxu1 }
  0xd4   :  { %238 = vst [vmem:[#allocation2 + $0x10] sm:$0xff] %v168_v35  ;;  %246 = vst [vmem:[#allocation2 + $0x50] sm:$0xff] %v208_v36  ;;  %v183_v39 = vadd.f32 %v321_v37, %v268_v20  ;;  %v223_v40 = vadd.f32 %v333_v38, %v268_v20 }
  0xd5   :  { %v177_v41 = vpop.f32.mrf.mxu0  ;;  %v217_v42 = vpop.f32.mrf.mxu1 }
  0xd6   :  { %241 = vst [vmem:[#allocation2 + $0x28] sm:$0xff] %v183_v39  ;;  %249 = vst [vmem:[#allocation2 + $0x68] sm:$0xff] %v223_v40  ;;  %v178_v43 = vadd.f32 %v268_v20, %v177_v41  ;;  %v218_v44 = vadd.f32 %v268_v20, %v217_v42 }
  0xd7   :  { %v324_v45 = vpop.f32.mrf.mxu0  ;;  %v336_v46 = vpop.f32.mrf.mxu1 }
  0xd8   :  { %240 = vst [vmem:[#allocation2 + $0x20] sm:$0xff] %v178_v43  ;;  %248 = vst [vmem:[#allocation2 + $0x60] sm:$0xff] %v218_v44  ;;  %v193_v47 = vadd.f32 %v324_v45, %v268_v20  ;;  %v233_v48 = vadd.f32 %v336_v46, %v268_v20 }
  0xd9   :  { %v187_v49 = vpop.f32.mrf.mxu0  ;;  %v227_v50 = vpop.f32.mrf.mxu1 }
  0xda   :  { %243 = vst [vmem:[#allocation2 + $0x38] sm:$0xff] %v193_v47  ;;  %251 = vst [vmem:[#allocation2 + $0x78] sm:$0xff] %v233_v48  ;;  %v188_v51 = vadd.f32 %v268_v20, %v187_v49  ;;  %v228_v52 = vadd.f32 %v268_v20, %v227_v50 }
  0xdc   :  { %242 = vst [vmem:[#allocation2 + $0x30] sm:$0xff] %v188_v51  ;;  %250 = vst [vmem:[#allocation2 + $0x70] sm:$0xff] %v228_v52 }
  0xdd   :  { %359 = shalt.err (!%p356_p4)
}
  0xde   :  { %s371_s26 = smov 128   ;;  %s372_s27 = smov 8  }
  0xdf   :  { %263 = dma.vmem_to_hbm [thread:$0]  %s258_s2, 2048, %s478_s3, [#allocation3], %s371_s26, %s371_s26, %s372_s27  }
  0xe0   :  { %368 = dma.done.wait [#allocation3], 2048  }
  0xe1   :  { %369 = vsyncadd [#allocation3], 4294965248 }
  0xe2   :  { %267 = vsyncpa [#allocation3], 1 }

</bundles_post_ra>
